<compile_context>
chip_gen: v7x
topology: tpu7x:2x2x1
jax: 0.10.0
libtpu: 0.0.40
codegen_flags: <defaults>
</compile_context>

<pallas_src>
import math
import numpy as np
import jax
import jax.numpy as jnp
from jax import lax
from jax.experimental import pallas as pl
from jax.experimental.pallas import tpu as pltpu

EPS = 1e-5           # layer-norm eps
_SUBLANE_BF16 = 16   # bf16 packs 16 sublanes per vreg


def _round_up(n, m):
    return (n + m - 1) // m * m


def _bilinear_upsample_h(x, h_out):
    """(2,1) bilinear upsample along H, align_corners=True, exact f32 2-tap blend."""
    h_in = x.shape[2]
    src = np.arange(h_out) * (h_in - 1) / (h_out - 1)
    i0 = np.floor(src).astype(np.int32)
    i1 = np.minimum(i0 + 1, h_in - 1)
    f = jnp.asarray((src - i0).astype(np.float32))[None, None, :, None]
    return jnp.take(x, i0, axis=2) * (1.0 - f) + jnp.take(x, i1, axis=2) * f


_ROLL_PROBE = {}


def _mosaic_roll_mode():
    """'np'  -> pltpu.roll matches np.roll semantics (out[i] = in[i - shift]),
       'inv' -> opposite rotation direction,
       None  -> primitive unavailable here (fall back to jnp.roll in-kernel)."""
    if "mode" not in _ROLL_PROBE:
        try:
            def k(x_ref, o_ref):
                o_ref[...] = pltpu.roll(x_ref[...], 1, axis=1)
            x = jnp.tile(jnp.arange(128, dtype=jnp.float32)[None, :], (8, 1))
            y = pl.pallas_call(
                k, out_shape=jax.ShapeDtypeStruct((8, 128), jnp.float32))(x)
            _ROLL_PROBE["mode"] = "np" if float(y[0, 1]) == 0.0 else "inv"
        except Exception:
            _ROLL_PROBE["mode"] = None
    return _ROLL_PROBE["mode"]


def frame_decoder_pallas(x, skip, params, out_dtype=jnp.float32):
    B, Cin, H, W = x.shape
    _, Cout, Hf, Ws = skip.shape
    assert Hf == 2 * H and Ws == W
    assert Hf & (Hf - 1) == 0, "roll-butterfly layernorm assumes power-of-two Hf"
    Ctot = Cin + Cout
    HW = Hf * W                                  # lanes per (batch) frame

    C1P = _round_up(Ctot, _SUBLANE_BF16)         # conv1 input channels (padded)
    C2P = _round_up(Cout, _SUBLANE_BF16)         # conv1 output / conv2 input (padded)

    roll_mode = _mosaic_roll_mode()

    # ---------------- host-side prep (all linear-size, no dense HWxHW ops) ----
    xup = _bilinear_upsample_h(x, Hf).reshape(B, Cin, HW)        # exact f32
    skip_flat = skip.reshape(B, Cout, HW)

    cols = np.arange(HW, dtype=np.int32)
    hidx = jnp.asarray((cols // W).reshape(1, HW))               # lane -> h
    widx = jnp.asarray((cols % W).reshape(1, HW))                # lane -> w

    # gamma/beta pre-broadcast over w: column h*W + w holds gamma[:, h]
    gamma_full = jnp.repeat(params['gamma'].astype(jnp.float32), W, axis=1)
    beta_full = jnp.repeat(params['beta'].astype(jnp.float32), W, axis=1)

    # im2col-packed conv weights: column (k*Cpad + i), k = (dy+1)*3 + (dx+1)
    w1t = jnp.transpose(params['w1'], (0, 2, 3, 1))              # (Cout,3,3,Ctot)
    w1t = jnp.pad(w1t, ((0, C2P - Cout), (0, 0), (0, 0), (0, C1P - Ctot)))
    w1m = w1t.reshape(C2P, 9 * C1P).astype(jnp.bfloat16)
    b1p = jnp.pad(params['b1'], (0, C2P - Cout)).reshape(C2P, 1).astype(jnp.float32)

    w2t = jnp.transpose(params['w2'], (0, 2, 3, 1))              # (Cout,3,3,Cout)
    w2t = jnp.pad(w2t, ((0, 0), (0, 0), (0, 0), (0, C2P - Cout)))
    w2m = w2t.reshape(Cout, 9 * C2P).astype(jnp.bfloat16)
    b2c = params['b2'].reshape(Cout, 1).astype(jnp.float32)

    wim = params['wi'].reshape(Cout, Ctot).astype(jnp.bfloat16)
    bic = params['bi'].reshape(Cout, 1).astype(jnp.float32)

    offs = [(dy, dx) for dy in (-1, 0, 1) for dx in (-1, 0, 1)]

    # ---------------------------------- kernel --------------------------------
    def kernel(hidx_ref, widx_ref, x_ref, s_ref, g_ref, bt_ref,
               w1_ref, b1_ref, w2_ref, b2_ref, wi_ref, bi_ref, o_ref):
        f32, bf16 = jnp.float32, jnp.bfloat16

        def lroll(a, shift):
            """Cyclic lane roll, np.roll semantics: out[l] = a[(l - shift) % HW]."""
            shift = shift % HW
            if shift == 0:
                return a
            if roll_mode == "np":
                return pltpu.roll(a, shift, axis=1)
            if roll_mode == "inv":
                return pltpu.roll(a, HW - shift, axis=1)
            return jnp.roll(a, shift, axis=1)      # portable fallback (slice+concat)

        h_idx = hidx_ref[...]                      # (1, HW) int32
        w_idx = widx_ref[...]

        def im2col(a):
            """(R, HW) -> (9R, HW) bf16: value at (h+dy, w+dx) per tap, zero outside
            the (Hf, W) frame.  Cast once; rolls / masks / concat all in bf16."""
            a = a.astype(bf16)
            zero = jnp.zeros_like(a)
            up_ok, dn_ok = h_idx >= 1, h_idx <= Hf - 2
            lt_ok, rt_ok = w_idx >= 1, w_idx <= W - 2
            parts = []
            for dy, dx in offs:
                sh = dy * W + dx
                p = a if sh == 0 else lroll(a, -sh)          # out[l] = a[l + sh]
                valid = None
                if dy == -1:
                    valid = up_ok
                elif dy == 1:
                    valid = dn_ok
                if dx == -1:
                    valid = lt_ok if valid is None else valid & lt_ok
                elif dx == 1:
                    valid = rt_ok if valid is None else valid & rt_ok
                if valid is not None:
                    p = jnp.where(valid, p, zero)
                parts.append(p)
            return jnp.concatenate(parts, axis=0)

        def group_sum(a):
            """All-reduce over h (stride W) per (channel, w).  Since lane = h*W + w
            and the block holds exactly one (Hf, W) frame, a cyclic roll by k*W is
            exactly h -> (h+k) mod Hf: no edge selects needed (Hf power of two)."""
            s = a
            k = 1
            while k < Hf:
                s = s + lroll(s, -k * W)
                k *= 2
            return s

        # channel concat of (already upsampled) x with skip
        xc = jnp.concatenate([x_ref[0], s_ref[0]], axis=0)             # (Ctot, HW) f32

        # 1x1 identity conv first so xc's bf16 copy dies before the im2col slabs
        idn = jnp.dot(wi_ref[...], xc.astype(bf16),
                      preferred_element_type=f32) + bi_ref[...]        # (Cout, HW)

        # MultichannelLayerNorm over h per (channel, w), two-pass variance
        inv_hf = 1.0 / Hf
        mean = group_sum(xc) * inv_hf
        xm = xc - mean
        var = group_sum(xm * xm) * inv_hf
        xn = xm * lax.rsqrt(var + EPS) * g_ref[...] + bt_ref[...]      # (Ctot, HW)

        if C1P > Ctot:   # pad to a whole bf16 sublane tile for im2col alignment
            xn = jnp.concatenate([xn, jnp.zeros((C1P - Ctot, HW), f32)], axis=0)

        # conv1 3x3 (one bf16 MXU matmul over the im2col slab) + SquaredReLU
        h1 = jnp.dot(w1_ref[...], im2col(xn), preferred_element_type=f32) + b1_ref[...]
        h1 = jnp.maximum(h1, 0.0)
        h1 = h1 * h1                                                   # (C2P, HW)

        # conv2 3x3
        h2 = jnp.dot(w2_ref[...], im2col(h1), preferred_element_type=f32) + b2_ref[...]

        # residual (Dropout2d p=0 is an identity)
        o_ref[0] = (idn + h2).astype(o_ref.dtype)

    # ------------------------------- pallas_call ------------------------------
    def full(shape):   # shared across the batch grid
        return pl.BlockSpec(shape, lambda b, _n=len(shape): (0,) * _n)

    def perb(shape):   # one block per batch element
        return pl.BlockSpec(shape, lambda b, _n=len(shape): (b,) + (0,) * (_n - 1))

    out = pl.pallas_call(
        kernel,
        out_shape=jax.ShapeDtypeStruct((B, Cout, HW), out_dtype),
        grid_spec=pltpu.PrefetchScalarGridSpec(
            num_scalar_prefetch=0,
            grid=(B,),
            in_specs=[
                full((1, HW)),            # lane -> h
                full((1, HW)),            # lane -> w
                perb((1, Cin, HW)),       # upsampled x (f32)
                perb((1, Cout, HW)),      # skip (f32)
                full((Ctot, HW)),         # gamma (pre-broadcast over w)
                full((Ctot, HW)),         # beta
                full((C2P, 9 * C1P)),     # conv1 weights (im2col packed, bf16)
                full((C2P, 1)),           # conv1 bias (padded)
                full((Cout, 9 * C2P)),    # conv2 weights (bf16)
                full((Cout, 1)),          # conv2 bias
                full((Cout, Ctot)),       # 1x1 identity conv weight (bf16)
                full((Cout, 1)),          # identity bias
            ],
            out_specs=perb((1, Cout, HW)),
        ),
        compiler_params=pltpu.CompilerParams(dimension_semantics=("parallel",)),
    )(hidx, widx, xup, skip_flat, gamma_full, beta_full,
      w1m, b1p, w2m, b2c, wim, bic)

    return out.reshape(B, Cout, Hf, W)


def ref_forward(x, skip, params):
    """Pure-JAX f32 reference mirroring the PyTorch forward pass."""
    B, Cin, H, W = x.shape
    _, Cout, Hf, _ = skip.shape
    xu = _bilinear_upsample_h(x, Hf)
    xc = jnp.concatenate([xu, skip], axis=1)

    # MultichannelLayerNorm: normalize over H per (b, c, w); affine (c, h)
    xt = jnp.transpose(xc, (0, 1, 3, 2))
    mu = xt.mean(-1, keepdims=True)
    var = ((xt - mu) ** 2).mean(-1, keepdims=True)
    xn = (xt - mu) / jnp.sqrt(var + EPS)
    xn = xn * params['gamma'][None, :, None, :] + params['beta'][None, :, None, :]
    xn = jnp.transpose(xn, (0, 1, 3, 2))

    dn = ('NCHW', 'OIHW', 'NCHW')
    hp = lax.Precision.HIGHEST
    h = lax.conv_general_dilated(xn, params['w1'], (1, 1), ((1, 1), (1, 1)),
                                 dimension_numbers=dn, precision=hp)
    h = h + params['b1'][None, :, None, None]
    h = jnp.maximum(h, 0.0)
    h = h * h
    h = lax.conv_general_dilated(h, params['w2'], (1, 1), ((1, 1), (1, 1)),
                                 dimension_numbers=dn, precision=hp)
    h = h + params['b2'][None, :, None, None]
    idn = lax.conv_general_dilated(xc, params['wi'], (1, 1), ((0, 0), (0, 0)),
                                   dimension_numbers=dn, precision=hp)
    idn = idn + params['bi'][None, :, None, None]
    return idn + h


if __name__ == "__main__":
    # FrameDecoder(in_channels=8, out_channels=8, features=16), B=2, x: 8x8 frame
    B, Cin, Cout, H, W = 2, 8, 8, 8, 8
    Hf = 2 * H
    Ctot = Cin + Cout

    key = jax.random.PRNGKey(0)
    keys = jax.random.split(key, 10)
    x = jax.random.normal(keys[0], (B, Cin, H, W), jnp.float32)
    skip = jax.random.normal(keys[1], (B, Cout, Hf, W), jnp.float32)

    params = {
        'w1': jax.random.normal(keys[2], (Cout, Ctot, 3, 3), jnp.float32) / math.sqrt(Ctot * 9),
        'b1': 0.1 * jax.random.normal(keys[3], (Cout,), jnp.float32),
        'w2': jax.random.normal(keys[4], (Cout, Cout, 3, 3), jnp.float32) / math.sqrt(Cout * 9),
        'b2': 0.1 * jax.random.normal(keys[5], (Cout,), jnp.float32),
        'wi': jax.random.normal(keys[6], (Cout, Ctot, 1, 1), jnp.float32) / math.sqrt(Ctot),
        'bi': 0.1 * jax.random.normal(keys[7], (Cout,), jnp.float32),
        # MultichannelLayerNorm affine params
        'gamma': 1.0 + 0.1 * jax.random.normal(keys[8], (Ctot, Hf), jnp.float32),
        'beta': 0.05 * jax.random.normal(keys[9], (Ctot, Hf), jnp.float32),
    }

    out = jax.block_until_ready(frame_decoder_pallas(x, skip, params))
    assert out.shape == (B, Cout, Hf, W)

    ref = ref_forward(x, skip, params)
    err = float(jnp.max(jnp.abs(out - ref)))
    # Upsample / layernorm / accumulation are f32; the only bf16 rounding left is
    # on the conv MXU operands (SquaredReLU roughly doubles its effect), which
    # stays comfortably under 5e-2 at these contraction lengths.
    assert err < 5e-2, f"max abs err {err}"
    print("KERNEL_OK")
</pallas_src>

<mosaic_0001>
module attributes {stable_mosaic.version = 11 : i64} {
  func.func @k(%arg0: memref<8x128xf32, #tpu.memory_space<vmem>>, %arg1: memref<8x128xf32, #tpu.memory_space<vmem>>) attributes {dimension_semantics = [], scalar_prefetch = 0 : i64, scratch_operands = 0 : i64, tpu.core_type = #tpu.core_type<tc>} {
    %c0 = arith.constant 0 : index
    %c0_0 = arith.constant 0 : index
    %0 = vector.load %arg0[%c0, %c0_0] : memref<8x128xf32, #tpu.memory_space<vmem>>, vector<8x128xf32>
    %c1_i32 = arith.constant 1 : i32
    %1 = tpu.dynamic_rotate %0 by %c1_i32 dim 1 : vector<8x128xf32>, i32 -> vector<8x128xf32>
    %c0_1 = arith.constant 0 : index
    %c0_2 = arith.constant 0 : index
    %2 = vector.load %arg1[%c0_1, %c0_2] : memref<8x128xf32, #tpu.memory_space<vmem>>, vector<8x128xf32>
    tpu.vector_store %arg1[%c0_1, %c0_2], %1 {strides = array<i32>} : memref<8x128xf32, #tpu.memory_space<vmem>>, vector<8x128xf32>,
    return
  }
}

module attributes {stable_mosaic.version = 11 : i64} {
  func.func @kernel(%arg0: i32, %arg1: memref<1x128xi32, #tpu.memory_space<vmem>>, %arg2: memref<1x128xi32, #tpu.memory_space<vmem>>, %arg3: memref<1x8x128xf32, #tpu.memory_space<vmem>>, %arg4: memref<1x8x128xf32, #tpu.memory_space<vmem>>, %arg5: memref<16x128xf32, #tpu.memory_space<vmem>>, %arg6: memref<16x128xf32, #tpu.memory_space<vmem>>, %arg7: memref<16x144xbf16, #tpu.memory_space<vmem>>, %arg8: memref<16x1xf32, #tpu.memory_space<vmem>>, %arg9: memref<8x144xbf16, #tpu.memory_space<vmem>>, %arg10: memref<8x1xf32, #tpu.memory_space<vmem>>, %arg11: memref<8x16xbf16, #tpu.memory_space<vmem>>, %arg12: memref<8x1xf32, #tpu.memory_space<vmem>>, %arg13: memref<1x8x128xf32, #tpu.memory_space<vmem>>) attributes {dimension_semantics = [#tpu.dimension_semantics<parallel>], iteration_bounds = array<i64: 2>, scalar_prefetch = 0 : i64, scratch_operands = 0 : i64, tpu.core_type = #tpu.core_type<tc>, window_params = [{pipeline_mode = #tpu.pipeline_mode<synchronous>, transform_indices = @transform_0, window_bounds = array<i64: 1, 128>}, {pipeline_mode = #tpu.pipeline_mode<synchronous>, transform_indices = @transform_1, window_bounds = array<i64: 1, 128>}, {transform_indices = @transform_2, window_bounds = array<i64: 1, 8, 128>}, {transform_indices = @transform_3, window_bounds = array<i64: 1, 8, 128>}, {pipeline_mode = #tpu.pipeline_mode<synchronous>, transform_indices = @transform_4, window_bounds = array<i64: 16, 128>}, {pipeline_mode = #tpu.pipeline_mode<synchronous>, transform_indices = @transform_5, window_bounds = array<i64: 16, 128>}, {pipeline_mode = #tpu.pipeline_mode<synchronous>, transform_indices = @transform_6, window_bounds = array<i64: 16, 144>}, {pipeline_mode = #tpu.pipeline_mode<synchronous>, transform_indices = @transform_7, window_bounds = array<i64: 16, 1>}, {pipeline_mode = #tpu.pipeline_mode<synchronous>, transform_indices = @transform_8, window_bounds = array<i64: 8, 144>}, {pipeline_mode = #tpu.pipeline_mode<synchronous>, transform_indices = @transform_9, window_bounds = array<i64: 8, 1>}, {pipeline_mode = #tpu.pipeline_mode<synchronous>, transform_indices = @transform_10, window_bounds = array<i64: 8, 16>}, {pipeline_mode = #tpu.pipeline_mode<synchronous>, transform_indices = @transform_11, window_bounds = array<i64: 8, 1>}, {transform_indices = @transform_12, window_bounds = array<i64: 1, 8, 128>}]} {
    %c0 = arith.constant 0 : index
    %c0_0 = arith.constant 0 : index
    %0 = vector.load %arg1[%c0, %c0_0] : memref<1x128xi32, #tpu.memory_space<vmem>>, vector<1x128xi32>
    %c0_1 = arith.constant 0 : index
    %c0_2 = arith.constant 0 : index
    %1 = vector.load %arg2[%c0_1, %c0_2] : memref<1x128xi32, #tpu.memory_space<vmem>>, vector<1x128xi32>
    %c0_3 = arith.constant 0 : index
    %c0_4 = arith.constant 0 : index
    %c0_5 = arith.constant 0 : index
    %2 = vector.load %arg3[%c0_3, %c0_4, %c0_5] : memref<1x8x128xf32, #tpu.memory_space<vmem>>, vector<1x8x128xf32>
    %3 = vector.shape_cast %2 : vector<1x8x128xf32> to vector<8x128xf32>
    %c0_6 = arith.constant 0 : index
    %c0_7 = arith.constant 0 : index
    %c0_8 = arith.constant 0 : index
    %4 = vector.load %arg4[%c0_6, %c0_7, %c0_8] : memref<1x8x128xf32, #tpu.memory_space<vmem>>, vector<1x8x128xf32>
    %5 = vector.shape_cast %4 : vector<1x8x128xf32> to vector<8x128xf32>
    %6 = tpu.concatenate %3, %5 in 0 : vector<8x128xf32>, vector<8x128xf32> -> vector<16x128xf32>
    %c0_9 = arith.constant 0 : index
    %c0_10 = arith.constant 0 : index
    %7 = vector.load %arg11[%c0_9, %c0_10] : memref<8x16xbf16, #tpu.memory_space<vmem>>, vector<8x16xbf16>
    %8 = arith.truncf %6 : vector<16x128xf32> to vector<16x128xbf16>
    %cst = arith.constant dense<0.000000e+00> : vector<8x128xf32>
    %9 = tpu.matmul %7, %8, %cst {dimension_numbers = #tpu.dot_dimension_numbers<[1], [0], [0], [1], [0, 0, 1, 1], [], []>} : vector<8x16xbf16>, vector<16x128xbf16>, vector<8x128xf32> -> vector<8x128xf32>
    %c0_11 = arith.constant 0 : index
    %c0_12 = arith.constant 0 : index
    %10 = vector.load %arg12[%c0_11, %c0_12] : memref<8x1xf32, #tpu.memory_space<vmem>>, vector<8x1xf32>
    %11 = vector.broadcast %10 : vector<8x1xf32> to vector<8x128xf32>
    %12 = arith.addf %9, %11 : vector<8x128xf32>
    %13 = vector.extract_strided_slice %6 {offsets = [0, 8], sizes = [16, 120], strides = [1, 1]} : vector<16x128xf32> to vector<16x120xf32>
    %14 = vector.extract_strided_slice %6 {offsets = [0, 0], sizes = [16, 8], strides = [1, 1]} : vector<16x128xf32> to vector<16x8xf32>
    %15 = tpu.concatenate %13, %14 in 1 : vector<16x120xf32>, vector<16x8xf32> -> vector<16x128xf32>
    %16 = arith.addf %6, %15 : vector<16x128xf32>
    %17 = vector.extract_strided_slice %16 {offsets = [0, 16], sizes = [16, 112], strides = [1, 1]} : vector<16x128xf32> to vector<16x112xf32>
    %18 = vector.extract_strided_slice %16 {offsets = [0, 0], sizes = [16, 16], strides = [1, 1]} : vector<16x128xf32> to vector<16x16xf32>
    %19 = tpu.concatenate %17, %18 in 1 : vector<16x112xf32>, vector<16x16xf32> -> vector<16x128xf32>
    %20 = arith.addf %16, %19 : vector<16x128xf32>
    %21 = vector.extract_strided_slice %20 {offsets = [0, 32], sizes = [16, 96], strides = [1, 1]} : vector<16x128xf32> to vector<16x96xf32>
    %22 = vector.extract_strided_slice %20 {offsets = [0, 0], sizes = [16, 32], strides = [1, 1]} : vector<16x128xf32> to vector<16x32xf32>
    %23 = tpu.concatenate %21, %22 in 1 : vector<16x96xf32>, vector<16x32xf32> -> vector<16x128xf32>
    %24 = arith.addf %20, %23 : vector<16x128xf32>
    %25 = vector.extract_strided_slice %24 {offsets = [0, 64], sizes = [16, 64], strides = [1, 1]} : vector<16x128xf32> to vector<16x64xf32>
    %26 = vector.extract_strided_slice %24 {offsets = [0, 0], sizes = [16, 64], strides = [1, 1]} : vector<16x128xf32> to vector<16x64xf32>
    %27 = tpu.concatenate %25, %26 in 1 : vector<16x64xf32>, vector<16x64xf32> -> vector<16x128xf32>
    %28 = arith.addf %24, %27 : vector<16x128xf32>
    %cst_13 = arith.constant 6.250000e-02 : f32
    %29 = vector.broadcast %cst_13 : f32 to vector<16x128xf32>
    %30 = arith.mulf %28, %29 : vector<16x128xf32>
    %31 = arith.subf %6, %30 : vector<16x128xf32>
    %32 = arith.mulf %31, %31 : vector<16x128xf32>
    %33 = vector.extract_strided_slice %32 {offsets = [0, 8], sizes = [16, 120], strides = [1, 1]} : vector<16x128xf32> to vector<16x120xf32>
    %34 = vector.extract_strided_slice %32 {offsets = [0, 0], sizes = [16, 8], strides = [1, 1]} : vector<16x128xf32> to vector<16x8xf32>
    %35 = tpu.concatenate %33, %34 in 1 : vector<16x120xf32>, vector<16x8xf32> -> vector<16x128xf32>
    %36 = arith.addf %32, %35 : vector<16x128xf32>
    %37 = vector.extract_strided_slice %36 {offsets = [0, 16], sizes = [16, 112], strides = [1, 1]} : vector<16x128xf32> to vector<16x112xf32>
    %38 = vector.extract_strided_slice %36 {offsets = [0, 0], sizes = [16, 16], strides = [1, 1]} : vector<16x128xf32> to vector<16x16xf32>
    %39 = tpu.concatenate %37, %38 in 1 : vector<16x112xf32>, vector<16x16xf32> -> vector<16x128xf32>
    %40 = arith.addf %36, %39 : vector<16x128xf32>
    %41 = vector.extract_strided_slice %40 {offsets = [0, 32], sizes = [16, 96], strides = [1, 1]} : vector<16x128xf32> to vector<16x96xf32>
    %42 = vector.extract_strided_slice %40 {offsets = [0, 0], sizes = [16, 32], strides = [1, 1]} : vector<16x128xf32> to vector<16x32xf32>
    %43 = tpu.concatenate %41, %42 in 1 : vector<16x96xf32>, vector<16x32xf32> -> vector<16x128xf32>
    %44 = arith.addf %40, %43 : vector<16x128xf32>
    %45 = vector.extract_strided_slice %44 {offsets = [0, 64], sizes = [16, 64], strides = [1, 1]} : vector<16x128xf32> to vector<16x64xf32>
    %46 = vector.extract_strided_slice %44 {offsets = [0, 0], sizes = [16, 64], strides = [1, 1]} : vector<16x128xf32> to vector<16x64xf32>
    %47 = tpu.concatenate %45, %46 in 1 : vector<16x64xf32>, vector<16x64xf32> -> vector<16x128xf32>
    %48 = arith.addf %44, %47 : vector<16x128xf32>
    %cst_14 = arith.constant 6.250000e-02 : f32
    %49 = vector.broadcast %cst_14 : f32 to vector<16x128xf32>
    %50 = arith.mulf %48, %49 : vector<16x128xf32>
    %cst_15 = arith.constant 9.99999974E-6 : f32
    %51 = vector.broadcast %cst_15 : f32 to vector<16x128xf32>
    %52 = arith.addf %50, %51 : vector<16x128xf32>
    %53 = math.rsqrt %52 : vector<16x128xf32>
    %54 = arith.mulf %31, %53 : vector<16x128xf32>
    %c0_16 = arith.constant 0 : index
    %c0_17 = arith.constant 0 : index
    %55 = vector.load %arg5[%c0_16, %c0_17] : memref<16x128xf32, #tpu.memory_space<vmem>>, vector<16x128xf32>
    %56 = arith.mulf %54, %55 : vector<16x128xf32>
    %c0_18 = arith.constant 0 : index
    %c0_19 = arith.constant 0 : index
    %57 = vector.load %arg6[%c0_18, %c0_19] : memref<16x128xf32, #tpu.memory_space<vmem>>, vector<16x128xf32>
    %58 = arith.addf %56, %57 : vector<16x128xf32>
    %c0_20 = arith.constant 0 : index
    %c0_21 = arith.constant 0 : index
    %59 = vector.load %arg7[%c0_20, %c0_21] : memref<16x144xbf16, #tpu.memory_space<vmem>>, vector<16x144xbf16>
    %60 = arith.truncf %58 : vector<16x128xf32> to vector<16x128xbf16>
    %cst_22 = arith.constant 0.000000e+00 : bf16
    %61 = vector.broadcast %cst_22 : bf16 to vector<16x128xbf16>
    %c1_i32 = arith.constant 1 : i32
    %62 = vector.broadcast %c1_i32 : i32 to vector<1x128xi32>
    %63 = arith.cmpi sge, %0, %62 : vector<1x128xi32>
    %c14_i32 = arith.constant 14 : i32
    %64 = vector.broadcast %c14_i32 : i32 to vector<1x128xi32>
    %65 = arith.cmpi sle, %0, %64 : vector<1x128xi32>
    %c1_i32_23 = arith.constant 1 : i32
    %66 = vector.broadcast %c1_i32_23 : i32 to vector<1x128xi32>
    %67 = arith.cmpi sge, %1, %66 : vector<1x128xi32>
    %c6_i32 = arith.constant 6 : i32
    %68 = vector.broadcast %c6_i32 : i32 to vector<1x128xi32>
    %69 = arith.cmpi sle, %1, %68 : vector<1x128xi32>
    %70 = vector.extract_strided_slice %60 {offsets = [0, 119], sizes = [16, 9], strides = [1, 1]} : vector<16x128xbf16> to vector<16x9xbf16>
    %71 = vector.extract_strided_slice %60 {offsets = [0, 0], sizes = [16, 119], strides = [1, 1]} : vector<16x128xbf16> to vector<16x119xbf16>
    %72 = tpu.concatenate %70, %71 in 1 : vector<16x9xbf16>, vector<16x119xbf16> -> vector<16x128xbf16>
    %73 = arith.andi %63, %67 : vector<1x128xi1>
    %74 = vector.shape_cast %73 : vector<1x128xi1> to vector<1x128xi1>
    %75 = vector.broadcast %74 : vector<1x128xi1> to vector<16x128xi1>
    %76 = arith.select %75, %72, %61 : vector<16x128xi1>, vector<16x128xbf16>
    %77 = vector.extract_strided_slice %60 {offsets = [0, 120], sizes = [16, 8], strides = [1, 1]} : vector<16x128xbf16> to vector<16x8xbf16>
    %78 = vector.extract_strided_slice %60 {offsets = [0, 0], sizes = [16, 120], strides = [1, 1]} : vector<16x128xbf16> to vector<16x120xbf16>
    %79 = tpu.concatenate %77, %78 in 1 : vector<16x8xbf16>, vector<16x120xbf16> -> vector<16x128xbf16>
    %80 = vector.shape_cast %63 : vector<1x128xi1> to vector<1x128xi1>
    %81 = vector.broadcast %80 : vector<1x128xi1> to vector<16x128xi1>
    %82 = arith.select %81, %79, %61 : vector<16x128xi1>, vector<16x128xbf16>
    %83 = vector.extract_strided_slice %60 {offsets = [0, 121], sizes = [16, 7], strides = [1, 1]} : vector<16x128xbf16> to vector<16x7xbf16>
    %84 = vector.extract_strided_slice %60 {offsets = [0, 0], sizes = [16, 121], strides = [1, 1]} : vector<16x128xbf16> to vector<16x121xbf16>
    %85 = tpu.concatenate %83, %84 in 1 : vector<16x7xbf16>, vector<16x121xbf16> -> vector<16x128xbf16>
    %86 = arith.andi %63, %69 : vector<1x128xi1>
    %87 = vector.shape_cast %86 : vector<1x128xi1> to vector<1x128xi1>
    %88 = vector.broadcast %87 : vector<1x128xi1> to vector<16x128xi1>
    %89 = arith.select %88, %85, %61 : vector<16x128xi1>, vector<16x128xbf16>
    %90 = vector.extract_strided_slice %60 {offsets = [0, 127], sizes = [16, 1], strides = [1, 1]} : vector<16x128xbf16> to vector<16x1xbf16>
    %91 = vector.extract_strided_slice %60 {offsets = [0, 0], sizes = [16, 127], strides = [1, 1]} : vector<16x128xbf16> to vector<16x127xbf16>
    %92 = tpu.concatenate %90, %91 in 1 : vector<16x1xbf16>, vector<16x127xbf16> -> vector<16x128xbf16>
    %93 = vector.shape_cast %67 : vector<1x128xi1> to vector<1x128xi1>
    %94 = vector.broadcast %93 : vector<1x128xi1> to vector<16x128xi1>
    %95 = arith.select %94, %92, %61 : vector<16x128xi1>, vector<16x128xbf16>
    %96 = vector.extract_strided_slice %60 {offsets = [0, 1], sizes = [16, 127], strides = [1, 1]} : vector<16x128xbf16> to vector<16x127xbf16>
    %97 = vector.extract_strided_slice %60 {offsets = [0, 0], sizes = [16, 1], strides = [1, 1]} : vector<16x128xbf16> to vector<16x1xbf16>
    %98 = tpu.concatenate %96, %97 in 1 : vector<16x127xbf16>, vector<16x1xbf16> -> vector<16x128xbf16>
    %99 = vector.shape_cast %69 : vector<1x128xi1> to vector<1x128xi1>
    %100 = vector.broadcast %99 : vector<1x128xi1> to vector<16x128xi1>
    %101 = arith.select %100, %98, %61 : vector<16x128xi1>, vector<16x128xbf16>
    %102 = vector.extract_strided_slice %60 {offsets = [0, 7], sizes = [16, 121], strides = [1, 1]} : vector<16x128xbf16> to vector<16x121xbf16>
    %103 = vector.extract_strided_slice %60 {offsets = [0, 0], sizes = [16, 7], strides = [1, 1]} : vector<16x128xbf16> to vector<16x7xbf16>
    %104 = tpu.concatenate %102, %103 in 1 : vector<16x121xbf16>, vector<16x7xbf16> -> vector<16x128xbf16>
    %105 = arith.andi %65, %67 : vector<1x128xi1>
    %106 = vector.shape_cast %105 : vector<1x128xi1> to vector<1x128xi1>
    %107 = vector.broadcast %106 : vector<1x128xi1> to vector<16x128xi1>
    %108 = arith.select %107, %104, %61 : vector<16x128xi1>, vector<16x128xbf16>
    %109 = vector.extract_strided_slice %60 {offsets = [0, 8], sizes = [16, 120], strides = [1, 1]} : vector<16x128xbf16> to vector<16x120xbf16>
    %110 = vector.extract_strided_slice %60 {offsets = [0, 0], sizes = [16, 8], strides = [1, 1]} : vector<16x128xbf16> to vector<16x8xbf16>
    %111 = tpu.concatenate %109, %110 in 1 : vector<16x120xbf16>, vector<16x8xbf16> -> vector<16x128xbf16>
    %112 = vector.shape_cast %65 : vector<1x128xi1> to vector<1x128xi1>
    %113 = vector.broadcast %112 : vector<1x128xi1> to vector<16x128xi1>
    %114 = arith.select %113, %111, %61 : vector<16x128xi1>, vector<16x128xbf16>
    %115 = vector.extract_strided_slice %60 {offsets = [0, 9], sizes = [16, 119], strides = [1, 1]} : vector<16x128xbf16> to vector<16x119xbf16>
    %116 = vector.extract_strided_slice %60 {offsets = [0, 0], sizes = [16, 9], strides = [1, 1]} : vector<16x128xbf16> to vector<16x9xbf16>
    %117 = tpu.concatenate %115, %116 in 1 : vector<16x119xbf16>, vector<16x9xbf16> -> vector<16x128xbf16>
    %118 = arith.andi %65, %69 : vector<1x128xi1>
    %119 = vector.shape_cast %118 : vector<1x128xi1> to vector<1x128xi1>
    %120 = vector.broadcast %119 : vector<1x128xi1> to vector<16x128xi1>
    %121 = arith.select %120, %117, %61 : vector<16x128xi1>, vector<16x128xbf16>
    %122 = tpu.concatenate %76, %82, %89, %95, %60, %101, %108, %114, %121 in 0 : vector<16x128xbf16>, vector<16x128xbf16>, vector<16x128xbf16>, vector<16x128xbf16>, vector<16x128xbf16>, vector<16x128xbf16>, vector<16x128xbf16>, vector<16x128xbf16>, vector<16x128xbf16> -> vector<144x128xbf16>
    %cst_24 = arith.constant dense<0.000000e+00> : vector<16x128xf32>
    %123 = tpu.matmul %59, %122, %cst_24 {dimension_numbers = #tpu.dot_dimension_numbers<[1], [0], [0], [1], [0, 0, 1, 1], [], []>} : vector<16x144xbf16>, vector<144x128xbf16>, vector<16x128xf32> -> vector<16x128xf32>
    %c0_25 = arith.constant 0 : index
    %c0_26 = arith.constant 0 : index
    %124 = vector.load %arg8[%c0_25, %c0_26] : memref<16x1xf32, #tpu.memory_space<vmem>>, vector<16x1xf32>
    %125 = vector.broadcast %124 : vector<16x1xf32> to vector<16x128xf32>
    %126 = arith.addf %123, %125 : vector<16x128xf32>
    %cst_27 = arith.constant 0.000000e+00 : f32
    %127 = vector.broadcast %cst_27 : f32 to vector<16x128xf32>
    %128 = arith.maximumf %126, %127 : vector<16x128xf32>
    %129 = arith.mulf %128, %128 : vector<16x128xf32>
    %c0_28 = arith.constant 0 : index
    %c0_29 = arith.constant 0 : index
    %130 = vector.load %arg9[%c0_28, %c0_29] : memref<8x144xbf16, #tpu.memory_space<vmem>>, vector<8x144xbf16>
    %131 = arith.truncf %129 : vector<16x128xf32> to vector<16x128xbf16>
    %cst_30 = arith.constant 0.000000e+00 : bf16
    %132 = vector.broadcast %cst_30 : bf16 to vector<16x128xbf16>
    %c1_i32_31 = arith.constant 1 : i32
    %133 = vector.broadcast %c1_i32_31 : i32 to vector<1x128xi32>
    %134 = arith.cmpi sge, %0, %133 : vector<1x128xi32>
    %c14_i32_32 = arith.constant 14 : i32
    %135 = vector.broadcast %c14_i32_32 : i32 to vector<1x128xi32>
    %136 = arith.cmpi sle, %0, %135 : vector<1x128xi32>
    %c1_i32_33 = arith.constant 1 : i32
    %137 = vector.broadcast %c1_i32_33 : i32 to vector<1x128xi32>
    %138 = arith.cmpi sge, %1, %137 : vector<1x128xi32>
    %c6_i32_34 = arith.constant 6 : i32
    %139 = vector.broadcast %c6_i32_34 : i32 to vector<1x128xi32>
    %140 = arith.cmpi sle, %1, %139 : vector<1x128xi32>
    %141 = vector.extract_strided_slice %131 {offsets = [0, 119], sizes = [16, 9], strides = [1, 1]} : vector<16x128xbf16> to vector<16x9xbf16>
    %142 = vector.extract_strided_slice %131 {offsets = [0, 0], sizes = [16, 119], strides = [1, 1]} : vector<16x128xbf16> to vector<16x119xbf16>
    %143 = tpu.concatenate %141, %142 in 1 : vector<16x9xbf16>, vector<16x119xbf16> -> vector<16x128xbf16>
    %144 = arith.andi %134, %138 : vector<1x128xi1>
    %145 = vector.shape_cast %144 : vector<1x128xi1> to vector<1x128xi1>
    %146 = vector.broadcast %145 : vector<1x128xi1> to vector<16x128xi1>
    %147 = arith.select %146, %143, %132 : vector<16x128xi1>, vector<16x128xbf16>
    %148 = vector.extract_strided_slice %131 {offsets = [0, 120], sizes = [16, 8], strides = [1, 1]} : vector<16x128xbf16> to vector<16x8xbf16>
    %149 = vector.extract_strided_slice %131 {offsets = [0, 0], sizes = [16, 120], strides = [1, 1]} : vector<16x128xbf16> to vector<16x120xbf16>
    %150 = tpu.concatenate %148, %149 in 1 : vector<16x8xbf16>, vector<16x120xbf16> -> vector<16x128xbf16>
    %151 = vector.shape_cast %134 : vector<1x128xi1> to vector<1x128xi1>
    %152 = vector.broadcast %151 : vector<1x128xi1> to vector<16x128xi1>
    %153 = arith.select %152, %150, %132 : vector<16x128xi1>, vector<16x128xbf16>
    %154 = vector.extract_strided_slice %131 {offsets = [0, 121], sizes = [16, 7], strides = [1, 1]} : vector<16x128xbf16> to vector<16x7xbf16>
    %155 = vector.extract_strided_slice %131 {offsets = [0, 0], sizes = [16, 121], strides = [1, 1]} : vector<16x128xbf16> to vector<16x121xbf16>
    %156 = tpu.concatenate %154, %155 in 1 : vector<16x7xbf16>, vector<16x121xbf16> -> vector<16x128xbf16>
    %157 = arith.andi %134, %140 : vector<1x128xi1>
    %158 = vector.shape_cast %157 : vector<1x128xi1> to vector<1x128xi1>
    %159 = vector.broadcast %158 : vector<1x128xi1> to vector<16x128xi1>
    %160 = arith.select %159, %156, %132 : vector<16x128xi1>, vector<16x128xbf16>
    %161 = vector.extract_strided_slice %131 {offsets = [0, 127], sizes = [16, 1], strides = [1, 1]} : vector<16x128xbf16> to vector<16x1xbf16>
    %162 = vector.extract_strided_slice %131 {offsets = [0, 0], sizes = [16, 127], strides = [1, 1]} : vector<16x128xbf16> to vector<16x127xbf16>
    %163 = tpu.concatenate %161, %162 in 1 : vector<16x1xbf16>, vector<16x127xbf16> -> vector<16x128xbf16>
    %164 = vector.shape_cast %138 : vector<1x128xi1> to vector<1x128xi1>
    %165 = vector.broadcast %164 : vector<1x128xi1> to vector<16x128xi1>
    %166 = arith.select %165, %163, %132 : vector<16x128xi1>, vector<16x128xbf16>
    %167 = vector.extract_strided_slice %131 {offsets = [0, 1], sizes = [16, 127], strides = [1, 1]} : vector<16x128xbf16> to vector<16x127xbf16>
    %168 = vector.extract_strided_slice %131 {offsets = [0, 0], sizes = [16, 1], strides = [1, 1]} : vector<16x128xbf16> to vector<16x1xbf16>
    %169 = tpu.concatenate %167, %168 in 1 : vector<16x127xbf16>, vector<16x1xbf16> -> vector<16x128xbf16>
    %170 = vector.shape_cast %140 : vector<1x128xi1> to vector<1x128xi1>
    %171 = vector.broadcast %170 : vector<1x128xi1> to vector<16x128xi1>
    %172 = arith.select %171, %169, %132 : vector<16x128xi1>, vector<16x128xbf16>
    %173 = vector.extract_strided_slice %131 {offsets = [0, 7], sizes = [16, 121], strides = [1, 1]} : vector<16x128xbf16> to vector<16x121xbf16>
    %174 = vector.extract_strided_slice %131 {offsets = [0, 0], sizes = [16, 7], strides = [1, 1]} : vector<16x128xbf16> to vector<16x7xbf16>
    %175 = tpu.concatenate %173, %174 in 1 : vector<16x121xbf16>, vector<16x7xbf16> -> vector<16x128xbf16>
    %176 = arith.andi %136, %138 : vector<1x128xi1>
    %177 = vector.shape_cast %176 : vector<1x128xi1> to vector<1x128xi1>
    %178 = vector.broadcast %177 : vector<1x128xi1> to vector<16x128xi1>
    %179 = arith.select %178, %175, %132 : vector<16x128xi1>, vector<16x128xbf16>
    %180 = vector.extract_strided_slice %131 {offsets = [0, 8], sizes = [16, 120], strides = [1, 1]} : vector<16x128xbf16> to vector<16x120xbf16>
    %181 = vector.extract_strided_slice %131 {offsets = [0, 0], sizes = [16, 8], strides = [1, 1]} : vector<16x128xbf16> to vector<16x8xbf16>
    %182 = tpu.concatenate %180, %181 in 1 : vector<16x120xbf16>, vector<16x8xbf16> -> vector<16x128xbf16>
    %183 = vector.shape_cast %136 : vector<1x128xi1> to vector<1x128xi1>
    %184 = vector.broadcast %183 : vector<1x128xi1> to vector<16x128xi1>
    %185 = arith.select %184, %182, %132 : vector<16x128xi1>, vector<16x128xbf16>
    %186 = vector.extract_strided_slice %131 {offsets = [0, 9], sizes = [16, 119], strides = [1, 1]} : vector<16x128xbf16> to vector<16x119xbf16>
    %187 = vector.extract_strided_slice %131 {offsets = [0, 0], sizes = [16, 9], strides = [1, 1]} : vector<16x128xbf16> to vector<16x9xbf16>
    %188 = tpu.concatenate %186, %187 in 1 : vector<16x119xbf16>, vector<16x9xbf16> -> vector<16x128xbf16>
    %189 = arith.andi %136, %140 : vector<1x128xi1>
    %190 = vector.shape_cast %189 : vector<1x128xi1> to vector<1x128xi1>
    %191 = vector.broadcast %190 : vector<1x128xi1> to vector<16x128xi1>
    %192 = arith.select %191, %188, %132 : vector<16x128xi1>, vector<16x128xbf16>
    %193 = tpu.concatenate %147, %153, %160, %166, %131, %172, %179, %185, %192 in 0 : vector<16x128xbf16>, vector<16x128xbf16>, vector<16x128xbf16>, vector<16x128xbf16>, vector<16x128xbf16>, vector<16x128xbf16>, vector<16x128xbf16>, vector<16x128xbf16>, vector<16x128xbf16> -> vector<144x128xbf16>
    %cst_35 = arith.constant dense<0.000000e+00> : vector<8x128xf32>
    %194 = tpu.matmul %130, %193, %cst_35 {dimension_numbers = #tpu.dot_dimension_numbers<[1], [0], [0], [1], [0, 0, 1, 1], [], []>} : vector<8x144xbf16>, vector<144x128xbf16>, vector<8x128xf32> -> vector<8x128xf32>
    %c0_36 = arith.constant 0 : index
    %c0_37 = arith.constant 0 : index
    %195 = vector.load %arg10[%c0_36, %c0_37] : memref<8x1xf32, #tpu.memory_space<vmem>>, vector<8x1xf32>
    %196 = vector.broadcast %195 : vector<8x1xf32> to vector<8x128xf32>
    %197 = arith.addf %194, %196 : vector<8x128xf32>
    %198 = arith.addf %12, %197 : vector<8x128xf32>
    %c0_38 = arith.constant 0 : index
    %c0_39 = arith.constant 0 : index
    %c0_40 = arith.constant 0 : index
    %199 = vector.load %arg13[%c0_38, %c0_39, %c0_40] : memref<1x8x128xf32, #tpu.memory_space<vmem>>, vector<1x8x128xf32>
    %200 = vector.shape_cast %199 : vector<1x8x128xf32> to vector<8x128xf32>
    %201 = vector.shape_cast %198 : vector<8x128xf32> to vector<1x8x128xf32>
    tpu.vector_store %arg13[%c0_38, %c0_39, %c0_40], %201 {strides = array<i32>} : memref<1x8x128xf32, #tpu.memory_space<vmem>>, vector<1x8x128xf32>,
    return
  }
  func.func @transform_0(%arg0: i32) -> (i32, i32) {
    %c0_i32 = arith.constant 0 : i32
    %c0_i32_0 = arith.constant 0 : i32
    %c0_i32_1 = arith.constant 0 : i32
    return %c0_i32, %c0_i32_0 : i32, i32
  }
  func.func @transform_1(%arg0: i32) -> (i32, i32) {
    %c0_i32 = arith.constant 0 : i32
    %c0_i32_0 = arith.constant 0 : i32
    %c0_i32_1 = arith.constant 0 : i32
    return %c0_i32, %c0_i32_0 : i32, i32
  }
  func.func @transform_2(%arg0: i32) -> (i32, i32, i32) {
    %c0_i32 = arith.constant 0 : i32
    %c0_i32_0 = arith.constant 0 : i32
    %c0_i32_1 = arith.constant 0 : i32
    return %arg0, %c0_i32, %c0_i32_0 : i32, i32, i32
  }
  func.func @transform_3(%arg0: i32) -> (i32, i32, i32) {
    %c0_i32 = arith.constant 0 : i32
    %c0_i32_0 = arith.constant 0 : i32
    %c0_i32_1 = arith.constant 0 : i32
    return %arg0, %c0_i32, %c0_i32_0 : i32, i32, i32
  }
  func.func @transform_4(%arg0: i32) -> (i32, i32) {
    %c0_i32 = arith.constant 0 : i32
    %c0_i32_0 = arith.constant 0 : i32
    %c0_i32_1 = arith.constant 0 : i32
    return %c0_i32, %c0_i32_0 : i32, i32
  }
  func.func @transform_5(%arg0: i32) -> (i32, i32) {
    %c0_i32 = arith.constant 0 : i32
    %c0_i32_0 = arith.constant 0 : i32
    %c0_i32_1 = arith.constant 0 : i32
    return %c0_i32, %c0_i32_0 : i32, i32
  }
  func.func @transform_6(%arg0: i32) -> (i32, i32) {
    %c0_i32 = arith.constant 0 : i32
    %c0_i32_0 = arith.constant 0 : i32
    %c0_i32_1 = arith.constant 0 : i32
    return %c0_i32, %c0_i32_0 : i32, i32
  }
  func.func @transform_7(%arg0: i32) -> (i32, i32) {
    %c0_i32 = arith.constant 0 : i32
    %c0_i32_0 = arith.constant 0 : i32
    %c0_i32_1 = arith.constant 0 : i32
    return %c0_i32, %c0_i32_0 : i32, i32
  }
  func.func @transform_8(%arg0: i32) -> (i32, i32) {
    %c0_i32 = arith.constant 0 : i32
    %c0_i32_0 = arith.constant 0 : i32
    %c0_i32_1 = arith.constant 0 : i32
    return %c0_i32, %c0_i32_0 : i32, i32
  }
  func.func @transform_9(%arg0: i32) -> (i32, i32) {
    %c0_i32 = arith.constant 0 : i32
    %c0_i32_0 = arith.constant 0 : i32
    %c0_i32_1 = arith.constant 0 : i32
    return %c0_i32, %c0_i32_0 : i32, i32
  }
  func.func @transform_10(%arg0: i32) -> (i32, i32) {
    %c0_i32 = arith.constant 0 : i32
    %c0_i32_0 = arith.constant 0 : i32
    %c0_i32_1 = arith.constant 0 : i32
    return %c0_i32, %c0_i32_0 : i32, i32
  }
  func.func @transform_11(%arg0: i32) -> (i32, i32) {
    %c0_i32 = arith.constant 0 : i32
    %c0_i32_0 = arith.constant 0 : i32
    %c0_i32_1 = arith.constant 0 : i32
    return %c0_i32, %c0_i32_0 : i32, i32
  }
  func.func @transform_12(%arg0: i32) -> (i32, i32, i32) {
    %c0_i32 = arith.constant 0 : i32
    %c0_i32_0 = arith.constant 0 : i32
    %c0_i32_1 = arith.constant 0 : i32
    return %arg0, %c0_i32, %c0_i32_0 : i32, i32, i32
  }
}

</mosaic_0001>

<bundles_post_ra>
// kernel: tpu_custom_call.1
= control target key start
LH: loop header
LB: loop body
LE: loop exit
PB: predicated region body
PF: predicated region fallthrough
CT: control target
= control target key end

     0   :  { %6 = vsyncpa [#allocation3], 0  ;;  %s128_s0 = inlined_call_operand.hbm [shape: f32[8,128], index: 0, kind: input, shape index: {}]   ;;  %s129_s1 = inlined_call_operand.hbm [shape: f32[8,128], index: 1, kind: output, shape index: {}]  }
   0x1   :  { %7 = vsyncpa [#allocation4], 0  ;;  %s91_s6 = smov [#allocation2]   ;;  %s43_s10 = scalar_lea.hbm %s128_s0, 128 }
   0x2   :  { %s14_s7 = sshll.u32 %s91_s6, 4  ;;  %p44_p0 = scmp.ne.s32.totalorder %s128_s0, %s43_s10  ;;  %s15_s7 = int_to_ptr.vmem [resolvable:$true] %s14_s7 }
   0x3   :  { %p47_p1 = scmp.lt.u32.totalorder %s43_s10, %s128_s0 }
   0x5   :  { %p49_p2 = pnand %p47_p1, %p44_p0 }
   0x7   :  { %52 = shalt.err (!%p49_p2)
}
   0x8   :  { %s53_s15 = scalar_lea.vmem %s15_s7, 128  ;;  %p58_p4 = scmp.lt.s32.totalorder %s15_s7, %s15_s7 }
   0x9   :  { %p54_p3 = scmp.ne.s32.totalorder %s15_s7, %s53_s15  ;;  %p59_p5 = scmp.lt.s32.totalorder %s53_s15, %s53_s15 }
   0xb   :  { %p60_p6 = por %p59_p5, %p58_p4 }
   0xd   :  { %p61_p7 = pnand %p60_p6, %p54_p3 }
   0xf   :  { %64 = shalt.err (!%p61_p7)
}
  0x10   :  { %17 = dma.hbm_to_vmem [thread:$0]  %s128_s0, 128, %s15_s7, [#allocation3]  }
  0x11   :  { %87 = dma.done.wait [#allocation3], 128  }
  0x12   :  { %88 = vsyncadd [#allocation3], 4294967168  ;;  %v21_v0 = vld [vmem:[#allocation2] sm:$0xff]  ;;  %s92_s18 = smov 1   ;;  %s93_s19 = smov [#allocation5]  }
  0x13   :  { %22 = vrot.lane.b32.xlu0 %v21_v0, %s92_s18  ;;  %s31_s20 = sshll.u32 %s93_s19, 4  ;;  %s32_s20 = int_to_ptr.vmem [resolvable:$true] %s31_s20 }
  0x14   :  { %s65_s21 = scalar_lea.vmem %s32_s20, 128  ;;  %p70_p9 = scmp.lt.s32.totalorder %s32_s20, %s32_s20 }
  0x15   :  { %p66_p8 = scmp.ne.s32.totalorder %s32_s20, %s65_s21  ;;  %p71_p10 = scmp.lt.s32.totalorder %s65_s21, %s65_s21 }
  0x17   :  { %p72_p11 = por %p71_p10, %p70_p9 }
  0x19   :  { %p73_p12 = pnand %p72_p11, %p66_p8 }
  0x85   :  { %v23_v1 = vpop.permute.xlu0 %22 }
  0x86   :  { %24 = vst [vmem:[#allocation5] sm:$0xff] %v23_v1 }
  0x87   :  { %76 = shalt.err (!%p73_p12)
}
  0x88   :  { %s77_s0 = scalar_lea.hbm %s129_s1, 128 }
  0x89   :  { %p78_p13 = scmp.ne.s32.totalorder %s129_s1, %s77_s0  ;;  %p81_p0 = scmp.lt.u32.totalorder %s77_s0, %s129_s1 }
  0x8b   :  { %p83_p1 = pnand %p81_p0, %p78_p13 }
  0x8d   :  { %86 = shalt.err (!%p83_p1)
}
  0x8e   :  { %34 = dma.vmem_to_hbm [thread:$0]  %s32_s20, 128, %s129_s1, [#allocation4]  }
  0x8f   :  { %89 = dma.done.wait [#allocation4], 128  }
  0x90   :  { %90 = vsyncadd [#allocation4], 4294967168 }
  0x91   :  { %38 = vsyncpa [#allocation3], 1 }
  0x92   :  { %39 = vsyncpa [#allocation4], 1 }

// kernel: tpu_custom_call.1
= control target key start
LH: loop header
LB: loop body
LE: loop exit
PB: predicated region body
PF: predicated region fallthrough
CT: control target
= control target key end

     0   :  { %s1882_s0 = inlined_call_operand.vmem [shape: s32[1,128], index: 0, kind: input, shape index: {}]   ;;  %s1883_s1 = inlined_call_operand.hbm [shape: s32[1,128], index: 1, kind: input, shape index: {}]   ;;  %s1884_s2 = inlined_call_operand.vmem [shape: f32[2,8,128], index: 2, kind: input, shape index: {}]   ;;  %s1885_s3 = inlined_call_operand.vmem [shape: f32[2,8,128], index: 3, kind: input, shape index: {}]   ;;  %s1886_s4 = inlined_call_operand.vmem [shape: f32[16,128], index: 4, kind: input, shape index: {}]   ;;  %s1887_s5 = inlined_call_operand.hbm [shape: f32[16,128], index: 5, kind: input, shape index: {}]   ;;  %s1888_s6 = inlined_call_operand.hbm [shape: bf16[16,144], index: 6, kind: input, shape index: {}]   ;;  %s1889_s7 = inlined_call_operand.vmem [shape: f32[16,1], index: 7, kind: input, shape index: {}]   ;;  %s1890_s8 = inlined_call_operand.vmem [shape: bf16[8,144], index: 8, kind: input, shape index: {}]   ;;  %s1891_s9 = inlined_call_operand.vmem [shape: f32[8,1], index: 9, kind: input, shape index: {}]   ;;  %s1892_s10 = inlined_call_operand.vmem [shape: bf16[8,16], index: 10, kind: input, shape index: {}]   ;;  %s1893_s11 = inlined_call_operand.vmem [shape: f32[8,1], index: 11, kind: input, shape index: {}]   ;;  %s1894_s12 = inlined_call_operand.hbm [shape: f32[2,8,128], index: 12, kind: output, shape index: {}]  }
   0x1   :  { %1907 = sst [smem:[#allocation19_spill]] %s1894_s12 }
   0x2   :  { %17 = vsyncpa [#allocation3], 0 }
   0x3   :  { %18 = vsyncpa [#allocation6], 0 }
   0x4   :  { %19 = vsyncpa [#allocation4], 0 }
   0x5   :  { %21 = vsyncpa [#allocation4 + $0x1], 0  ;;  %s1446_s21 = smov 0   ;;  %s1448_s22 = smov 0  }
   0x6   :  { %s1450_s23 = smov 0   ;;  %s1452_s24 = smov 0  }
   0x7 LB: > { %1908 = sst [smem:[#allocation12_spill]] %s1347_s21  ;;  %s1467_s25 = sadd.s32 4294967295, %s1359_s24   ;;  %s1359_s24 = sphi %s1452_s24, %s1953_s24   ;;  %s1355_s23 = sphi %s1450_s23, %s1955_s23   ;;  %s1351_s22 = sphi %s1448_s22, %s1957_s22   ;;  %s1347_s21 = sphi %s1446_s21, %s1956_s21  }
   0x8   : > { %1909 = sst [smem:[#allocation13_spill]] %s1355_s23  ;;  %s1070_s26 = sadd.s32 4294967294, %s1359_s24  }
   0x9   : > { %1910 = sst [smem:[#allocation14_spill]] %s1359_s24  ;;  %s1471_s27 = sadd.s32 1, %s1359_s24  }
   0xa   : > { %1911 = sst [smem:[#allocation15_spill]] %s1471_s27  ;;  %s296_s28 = sadd.s32 1, %s1355_s23 }
   0xb   : > { %s293_s29 = ssub.s32 %s1359_s24, %s1471_s27  ;;  %p306_p0 = scmp.ne.s32.totalorder %s1355_s23, %s1351_s22 }
   0xc   : > { %p294_p1 = scmp.eq.s32.totalorder %s293_s29, 0  ;;  %p307_p2 = scmp.eq.s32.totalorder %s1467_s25, 1 }
   0xd   : > { %p312_p3 = scmp.ne.s32.totalorder %s1351_s22, %s1347_s21  ;;  %p313_p4 = scmp.eq.s32.totalorder %s1070_s26, 1 }
   0xe   : > { %s1482_s30 = scalar_select %p294_p1, %s1355_s23, %s296_s28  }
   0xf   : > { %p1484_p5 = por %p307_p2, %p306_p0  ;;  %p1488_p6 = por %p313_p4, %p312_p3 }
  0x10   : > { %1912 = sst [smem:[#allocation16_spill]] %s1482_s30  ;;  %p1071_p7 = scmp.ge.s32.totalorder %s1359_s24, 1 }
  0x11   : > { %s1913_s13 = scalar_select %p1484_p5, 1, 0 }
  0x12   : > { %s1915_s14 = scalar_select %p1488_p6, 1, 0 }
  0x13   : > { %1914 = sst [smem:[#allocation17_spill]] %s1913_s13  ;;  %p320_p8 = scmp.lt.s32.totalorder %s1359_s24, 3 }
  0x14   : > { %1916 = sst [smem:[#allocation18_spill]] %s1915_s14  ;;  %p1899_p9 = scmp.eq.s32.totalorder %s1467_s25, 0 }
  0x15   : > { %p1495_p10 = pnand %p1071_p7, %p320_p8  ;;  %s1361_s16 = smov [#allocation5]  }
  0x16   : > { %s349_s17 = sshll.u32 %s1361_s16, 4  ;;  %s1362_s19 = smov [#allocation2]   ;;  %s1501_s17 = int_to_ptr.vmem [resolvable:$true] %s349_s17 }
  0x17   : > { %s1917_s15 = scalar_select %p1495_p10, 1, 0 }
  0x18   : > { %p1122_p11 = pneg %p1495_p10  ;;  %s336_s20 = sshll.u32 %s1362_s19, 4  ;;  %s1509_s20 = int_to_ptr.vmem [resolvable:$true] %s336_s20 }
  0x19   : > { %s1363_s26 = smov [#allocation7]   ;;  %s1205_s16 = scalar_lea.hbm %s1887_s5, 256 }
  0x1a   : > { %p1505_p12 = pnand %p1899_p9, %p1122_p11  ;;  %s1511_s28 = sshll.u32 %s1363_s26, 4  ;;  %s363_s28 = int_to_ptr.vmem [resolvable:$true] %s1511_s28 }
  0x1b   : > { %p1206_p13 = scmp.ne.s32.totalorder %s1887_s5, %s1205_s16  ;;  %p1212_p3 = scmp.lt.u32.totalorder %s1205_s16, %s1887_s5 }
  0x1c   : > { %p1521_p0 = pneg %p1505_p12 }
  0x1e   : > { %p1208_p1 = pnand %p1521_p0, %p1206_p13 }
  0x20   : > { %p1209_p2 = pneg %p1208_p1 }
  0x22   : > { %p1214_p4 = pnand %p1212_p3, %p1209_p2 }
  0x24   : > { %1217 = shalt.err (!%p1214_p4)
}
  0x25   : > { %s1218_s23 = scalar_lea.vmem %s1501_s17, 256  ;;  %p1226_p9 = scmp.lt.s32.totalorder %s1501_s17, %s1501_s17 }
  0x26   : > { %p1219_p7 = scmp.ne.s32.totalorder %s1501_s17, %s1218_s23  ;;  %p1227_p6 = scmp.lt.s32.totalorder %s1218_s23, %s1218_s23 }
  0x28   : > { %p1221_p8 = pnand %p1219_p7, %p1521_p0  ;;  %p1228_p13 = por %p1227_p6, %p1226_p9 }
  0x2a   : > { %p1222_p11 = pneg %p1221_p8 }
  0x2c   : > { %p1229_p1 = pnand %p1228_p13, %p1222_p11 }
  0x2e   : > { %1232 = shalt.err (!%p1229_p1)
}
  0x2f   : > { %s1364_s27 = smov 128   ;;  %s1365_s30 = smov 8  }
  0x30   : > { %1128 = dma.hbm_to_vmem [thread:$0]  (!%p1505_p12), %s1887_s5, 256, %s1501_s17, [#allocation6], %s1364_s27, %s1364_s27, %s1365_s30  }
  0x31   : > { %s1233_s23 = scalar_lea.hbm %s1883_s1, 16 }
  0x32   : > { %p1234_p6 = scmp.ne.s32.totalorder %s1883_s1, %s1233_s23  ;;  %p1240_p3 = scmp.lt.u32.totalorder %s1233_s23, %s1883_s1 }
  0x34   : > { %p1236_p9 = pnand %p1234_p6, %p1521_p0 }
  0x36   : > { %p1237_p2 = pneg %p1236_p9 }
  0x38   : > { %p1242_p4 = pnand %p1240_p3, %p1237_p2 }
  0x3a   : > { %1245 = shalt.err (!%p1242_p4)
}
  0x3b   : > { %s1246_s17 = scalar_lea.vmem %s1509_s20, 16  ;;  %s1253_s21 = scalar_lea.vmem %s1509_s20, 32 }
  0x3c   : > { %p1247_p7 = scmp.ne.s32.totalorder %s1509_s20, %s1246_s17  ;;  %p1254_p13 = scmp.lt.s32.totalorder %s1509_s20, %s1509_s20 }
  0x3d   : > { %p1255_p1 = scmp.lt.s32.totalorder %s1253_s21, %s1246_s17 }
  0x3e   : > { %p1249_p8 = pnand %p1247_p7, %p1521_p0 }
  0x3f   : > { %p1256_p6 = por %p1255_p1, %p1254_p13 }
  0x40   : > { %p1250_p11 = pneg %p1249_p8 }
  0x42   : > { %p1257_p9 = pnand %p1256_p6, %p1250_p11 }
  0x44   : > { %1260 = shalt.err (!%p1257_p9)
}
  0x45   : > { %1125 = dma.hbm_to_vmem [thread:$0]  (!%p1505_p12), %s1883_s1, 16, %s1509_s20, [#allocation3]  }
  0x46   : > { %s1261_s16 = scalar_lea.hbm %s1888_s6, 256 }
  0x47   : > { %p1262_p2 = scmp.ne.s32.totalorder %s1888_s6, %s1261_s16  ;;  %p1268_p7 = scmp.lt.u32.totalorder %s1261_s16, %s1888_s6 }
  0x49   : > { %p1264_p3 = pnand %p1262_p2, %p1521_p0 }
  0x4b   : > { %p1265_p4 = pneg %p1264_p3 }
  0x4d   : > { %p1270_p8 = pnand %p1268_p7, %p1265_p4 }
  0x4f   : > { %1273 = shalt.err (!%p1270_p8)
}
  0x50   : > { %s1274_s21 = scalar_lea.vmem %s363_s28, 256  ;;  %p1282_p6 = scmp.lt.s32.totalorder %s363_s28, %s363_s28 }
  0x51   : > { %p1275_p11 = scmp.ne.s32.totalorder %s363_s28, %s1274_s21  ;;  %p1283_p9 = scmp.lt.s32.totalorder %s1274_s21, %s1274_s21 }
  0x53   : > { %p1277_p13 = pnand %p1275_p11, %p1521_p0  ;;  %p1284_p5 = por %p1283_p9, %p1282_p6 }
  0x55   : > { %p1278_p1 = pneg %p1277_p13 }
  0x57   : > { %p1285_p10 = pnand %p1284_p5, %p1278_p1 }
  0x59   : > { %1288 = shalt.err (!%p1285_p10)
}
  0x5a   : > { %1131 = dma.hbm_to_vmem [thread:$0]  (!%p1505_p12), %s1888_s6, 256, %s363_s28, [#allocation6], %s1364_s27, %s1364_s27, %s1365_s30  }
  0x5b   : > { %p1920_p2 = scmp.ne.s32.totalorder %s1917_s15, 0 }
  0x5c   : > { %p1921_p0 = scmp.eq.s32.totalorder (!%p1920_p2), %s1467_s25, 0 }
  0x5d   : > { %407 = sbr.rel (%p1920_p2) target bundleno = 1832 (0x728), region = 68 }
  0x64   : > { %1334 = dma.done.wait (%p1921_p0), [#allocation3], 16   ;;  %p1922_p3 = pmov %p1921_p0 }
  0x65   : > { %p1923_p5 = pmov %p1921_p0 }
  0x66   : > { %1336 = vsyncadd (%p1922_p3), [#allocation3], 4294967280 }
  0x67   : > { %1338 = dma.done.wait (%p1923_p5), [#allocation6], 512   ;;  %p1924_p10 = pmov %p1921_p0 }
  0x68   : > { %p460_p4 = scmp.lt.s32.totalorder %s1467_s25, 1  ;;  %s1366_s29 = smov 120   ;;  %v1370_v36 = vmov 0   ;;  %v621_v47 = vld [vmem:[%s1886_s4] sm:$0xff]  ;;  %v622_v49 = vld [vmem:[%s1886_s4 + $0x8] sm:$0xff]  ;;  %vm483_vm0 = vcmask 130048   ;;  %v643_v61 = vlaneseq }
  0x69   : > { %1340 = vsyncadd (%p1924_p10), [#allocation6], 4294966784  ;;  %s1367_s16 = smov 112   ;;  %s1368_s19 = smov 96   ;;  %809 = vmatprep.subr.bf16.mxu1 %v1370_v36  ;;  %1194 = vset.pattern.permute.xlu0 %v1370_v36  ;;  %v625_v52 = vld [vmem:[#allocation5] sm:$0xff]  ;;  %v626_v53 = vld [vmem:[#allocation5 + $0x8] sm:$0xff] }
  0x6a   : > { %s461_s14 = scalar_select %p460_p4, %s1467_s25, 1  ;;  %1195 = vset.pattern.permute.xlu1 %v1370_v36  ;;  %v1198_v58 = vld [vmem:[#allocation7 + $0x4] ss:$8 sps:$4 sm:$0xff]   ;;  %v786_v60 = vld [vmem:[%s1889_s7 + $0x8] sm:$0xff] }
  0x6b   : > { %s1369_s26 = smov 64   ;;  %s1371_s12 = smov 8   ;;  %1086 = vmatprep.mubr.msk.bf16.mxu1 %vm483_vm0, %v1198_v58  ;;  %v785_v59 = vld [vmem:[%s1889_s7] sm:$0xff] }
  0x6c   : > { %s1081_s18 = sshll.u32 %s461_s14, 3  ;;  %s1372_s14 = smov 9   ;;  %v471_v62 = vld [vmem:[%s1882_s0] sm:$0x1] }
  0x6d   : > { %s463_s27 = scalar_lea.vmem %s1884_s2, %s1081_s18  ;;  %s467_s13 = scalar_lea.vmem %s1885_s3, %s1081_s18  ;;  %v472_v63 = vld [vmem:[#allocation2] sm:$0x1]  ;;  %vm632_vm1 = vcmp.ge.s32.totalorder %v471_v62, 1  ;;  %vm633_vm12 = vcmp.le.s32.totalorder %v471_v62, 14 }
  0x6e   : > { %v1609_v0 = vld [vmem:[%s463_s27] sm:$0xff]  ;;  %s1373_s18 = smov 1   ;;  %s1374_s28 = smov 7   ;;  %vm634_vm2 = vcmp.ge.s32.totalorder %v472_v63, 1  ;;  %vm635_vm4 = vcmp.le.s32.totalorder %v472_v63, 6 }
  0x6f   : > { %529 = vrot.lane.b32.xlu0 %v1609_v0, %s1366_s29  ;;  %v1613_v1 = vld [vmem:[%s467_s13] sm:$0xff]  ;;  %s1375_s15 = smov 121   ;;  %s1376_s27 = smov 127   ;;  %vm641_vm3 = vmand %vm632_vm1, %vm634_vm2  ;;  %v1196_v63 = vld [vmem:[#allocation7] ss:$8 sps:$4 sm:$0xff]  }
  0x70   : > { %s1377_s30 = smov 119   ;;  %vm678_vm5 = vmand %vm632_vm1, %vm635_vm4  ;;  %s1946_s23 = sld [smem:[#allocation19_spill]] }
  0x71   : > { %vm733_vm15 = vmand %vm633_vm12, %vm634_vm2  ;;  %s1380_s24 = smov [#allocation8]  }
  0x72   : > { %s1293_s13 = sshll.u32 %s1380_s24, 4  ;;  %s1294_s13 = int_to_ptr.vmem [resolvable:$false] %s1293_s13 }
  0x73   : > { %531 = vrot.lane.b32.xlu0 %v1613_v1, %s1366_s29 }
  0x76   : > { %s1947_s17 = smov %s1946_s23 }
  0xe1   : > { %v530_v2 = vpop.permute.xlu0 %529 }
  0xe2   : > { %v535_v3 = vadd.f32 %v530_v2, %v1609_v0  ;;  %v644_v2 = vshrl.u32 %v643_v61, 7 }
  0xe4   : > { %539 = vrot.lane.b32.xlu1 %v535_v3, %s1367_s16 }
  0xe5   : > { %v532_v4 = vpop.permute.xlu0 %531 }
  0xe6   : > { %v536_v5 = vadd.f32 %v532_v4, %v1613_v1  ;;  %v642_v4 = vsel %vm641_vm3, 1, %v1370_v36 }
  0xe8   : > { %541 = vrot.lane.b32.xlu1 %v536_v5, %s1367_s16 }
 0x156   : > { %v540_v6 = vpop.permute.xlu1 %539 }
 0x157   : > { %v545_v7 = vadd.f32 %v540_v6, %v535_v3  ;;  %v1673_v3 = vsub.s32 0, %v644_v2  ;;  %v660_v6 = vsel %vm632_vm1, 1, %v1370_v36  ;;  %v476_v2 = vpack.c.bf16 %v1613_v1, %v1609_v0 }
 0x159   : > { %549 = vrot.lane.b32.xlu0 %v545_v7, %s1368_s19 }
 0x15a   : > { %v542_v8 = vpop.permute.xlu1 %541 }
 0x15b   : > { %v546_v9 = vadd.f32 %v542_v8, %v536_v5  ;;  %v646_v5 = vrot.slane %v642_v4, %v1673_v3  ;;  %v679_v8 = vsel %vm678_vm5, 1, %v1370_v36 }
 0x15d   : > { %551 = vrot.lane.b32.xlu1 %v546_v9, %s1368_s19  ;;  %vm647_vm6 = vcmp.eq.s32.totalorder %v646_v5, 1  ;;  %v475_v5 = vld [vmem:[%s1892_s10] sm:$0xf] }
 0x15e   : > { %vm648_vm7 = vmpackc.low %vm647_vm6, %vm647_vm6 }
 0x15f   : > { %vm770_vm6 = vmand %vm633_vm12, %vm635_vm4 }
 0x1cb   : > { %v550_v10 = vpop.permute.xlu0 %549 }
 0x1cc   : > { %v555_v11 = vadd.f32 %v550_v10, %v545_v7  ;;  %v664_v7 = vrot.slane %v660_v6, %v1673_v3  ;;  %v697_v10 = vsel %vm634_vm2, 1, %v1370_v36 }
 0x1ce   : > { %559 = vrot.lane.b32.xlu0 %v555_v11, %s1369_s26  ;;  %vm665_vm8 = vcmp.eq.s32.totalorder %v664_v7, 1 }
 0x1cf   : > { %v552_v12 = vpop.permute.xlu1 %551  ;;  %vm666_vm9 = vmpackc.low %vm665_vm8, %vm665_vm8 }
 0x1d0   : > { %v556_v13 = vadd.f32 %v552_v12, %v546_v9  ;;  %v683_v9 = vrot.slane %v679_v8, %v1673_v3  ;;  %v701_v12 = vrot.slane %v697_v10, %v1673_v3 }
 0x1d2   : > { %561 = vrot.lane.b32.xlu1 %v556_v13, %s1369_s26  ;;  %vm684_vm10 = vcmp.eq.s32.totalorder %v683_v9, 1  ;;  %vm1688_vm13 = vcmp.eq.s32.totalorder %v701_v12, 1 }
 0x1d3   : > { %vm685_vm11 = vmpackc.low %vm684_vm10, %vm684_vm10 }
 0x1d4   : > { %vm703_vm1 = vmpackc.low %vm1688_vm13, %vm1688_vm13 }
 0x240   : > { %v560_v14 = vpop.permute.xlu0 %559 }
 0x241   : > { %v565_v15 = vadd.f32 %v560_v14, %v555_v11  ;;  %v649_v11 = vsel %vm648_vm7, 65537, %v1370_v36  ;;  %v667_v14 = vsel %vm666_vm9, 65537, %v1370_v36 }
 0x243   : > { %v567_v16 = vmul.f32 0.0625, %v565_v15 }
 0x244   : > { %v562_v17 = vpop.permute.xlu1 %561 }
 0x245   : > { %v569_v18 = vsub.f32 %v1609_v0, %v567_v16  ;;  %v566_v19 = vadd.f32 %v562_v17, %v556_v13  ;;  %v653_v13 = vrot.slane %v649_v11, %v1673_v3  ;;  %v671_v16 = vrot.slane %v667_v14, %v1673_v3 }
 0x247   : > { %v568_v20 = vmul.f32 0.0625, %v566_v19  ;;  %v571_v21 = vmul.f32 %v569_v18, %v569_v18  ;;  %vm1693_vm14 = vcmp.ne.s16.totalorder %v653_v13, 0  ;;  %v686_v19 = vsel %vm685_vm11, 65537, %v1370_v36 }
 0x248   : > { %vm1708_vm3 = vcmp.ne.s16.totalorder %v671_v16, 0  ;;  %v897_v16 = vld [vmem:[%s1891_s9] sm:$0xff] }
 0x249   : > { %v570_v22 = vsub.f32 %v1613_v1, %v568_v20  ;;  %575 = vrot.lane.b32.xlu0 %v571_v21, %s1366_s29 }
 0x24b   : > { %v572_v23 = vmul.f32 %v570_v22, %v570_v22 }
 0x24d   : > { %577 = vrot.lane.b32.xlu1 %v572_v23, %s1366_s29 }
 0x2bb   : > { %v576_v24 = vpop.permute.xlu0 %575 }
 0x2bc   : > { %v581_v25 = vadd.f32 %v576_v24, %v571_v21 }
 0x2be   : > { %585 = vrot.lane.b32.xlu0 %v581_v25, %s1367_s16 }
 0x2bf   : > { %v578_v26 = vpop.permute.xlu1 %577 }
 0x2c0   : > { %v582_v27 = vadd.f32 %v578_v26, %v572_v23  ;;  %v734_v26 = vsel %vm733_vm15, 1, %v1370_v36 }
 0x2c2   : > { %587 = vrot.lane.b32.xlu1 %v582_v27, %s1367_s16 }
 0x330   : > { %v586_v28 = vpop.permute.xlu0 %585 }
 0x331   : > { %v591_v29 = vadd.f32 %v586_v28, %v581_v25  ;;  %v690_v25 = vrot.slane %v686_v19, %v1673_v3  ;;  %v854_v19 = vld [vmem:[%s1890_s8] sm:$0xff] }
 0x333   : > { %595 = vrot.lane.b32.xlu0 %v591_v29, %s1368_s19  ;;  %vm1724_vm5 = vcmp.ne.s16.totalorder %v690_v25, 0 }
 0x334   : > { %v588_v30 = vpop.permute.xlu1 %587 }
 0x335   : > { %v592_v31 = vadd.f32 %v588_v30, %v582_v27  ;;  %v704_v27 = vsel %vm703_vm1, 65537, %v1370_v36 }
 0x337   : > { %597 = vrot.lane.b32.xlu1 %v592_v31, %s1368_s19 }
 0x3a5   : > { %v596_v32 = vpop.permute.xlu0 %595 }
 0x3a6   : > { %v601_v33 = vadd.f32 %v596_v32, %v591_v29  ;;  %v738_v29 = vrot.slane %v734_v26, %v1673_v3 }
 0x3a8   : > { %605 = vrot.lane.b32.xlu0 %v601_v33, %s1369_s26  ;;  %vm739_vm8 = vcmp.eq.s32.totalorder %v738_v29, 1 }
 0x3a9   : > { %v598_v34 = vpop.permute.xlu1 %597 }
 0x3aa   : > { %v602_v35 = vadd.f32 %v598_v34, %v592_v31  ;;  %v708_v31 = vrot.slane %v704_v27, %v1673_v3  ;;  %v752_v34 = vsel %vm633_vm12, 1, %v1370_v36 }
 0x3ac   : > { %607 = vrot.lane.b32.xlu1 %v602_v35, %s1369_s26  ;;  %vm1739_vm9 = vcmp.ne.s16.totalorder %v708_v31, 0 }
 0x41a   : > { %v606_v37 = vpop.permute.xlu0 %605 }
 0x41b   : > { %v611_v38 = vadd.f32 %v606_v37, %v601_v33  ;;  %v756_v37 = vrot.slane %v752_v34, %v1673_v3 }
 0x41d   : > { %v613_v39 = vmul.f32 0.0625, %v611_v38  ;;  %vm757_vm10 = vcmp.eq.s32.totalorder %v756_v37, 1  ;;  %v1087_v37 = vcombine.low %v854_v19, %v854_v19 }
 0x41e   : > { %v608_v40 = vpop.permute.xlu1 %607  ;;  %vm758_vm11 = vmpackc.low %vm757_vm10, %vm757_vm10 }
 0x41f   : > { %v615_v41 = vadd.f32 1e-05, %v613_v39  ;;  %v612_v42 = vadd.f32 %v608_v40, %v602_v35  ;;  %v771_v40 = vsel %vm770_vm6, 1, %v1370_v36 }
 0x421   : > { %1201 = vrsqrt.f32 %v615_v41  ;;  %v614_v43 = vmul.f32 0.0625, %v612_v42 }
 0x423   : > { %v616_v44 = vadd.f32 1e-05, %v614_v43  ;;  %v775_v43 = vrot.slane %v771_v40, %v1673_v3 }
 0x425   : > { %1203 = vrsqrt.f32 %v616_v44  ;;  %vm776_vm12 = vcmp.eq.s32.totalorder %v775_v43, 1 }
 0x426   : > { %vm777_vm15 = vmpackc.low %vm776_vm12, %vm776_vm12 }
 0x42b   : > { %v1202_v45 = vpop.eup %1201 }
 0x42c   : > { %v619_v46 = vmul.f32 %v1202_v45, %v569_v18  ;;  %v715_v18 = vsel %vm635_vm4, 1, %v1370_v36  ;;  %vm740_vm4 = vmpackc.low %vm739_vm8, %vm739_vm8 }
 0x42d   : > { %v741_v45 = vsel %vm740_vm4, 65537, %v1370_v36 }
 0x42e   : > { %v623_v50 = vmul.f32 %v621_v47, %v619_v46  ;;  %v745_v46 = vrot.slane %v741_v45, %v1673_v3 }
 0x42f   : > { %v1204_v48 = vpop.eup %1203 }
 0x430   : > { %v620_v51 = vmul.f32 %v1204_v48, %v570_v22  ;;  %v627_v55 = vadd.f32 %v625_v52, %v623_v50  ;;  %v719_v22 = vrot.slane %v715_v18, %v1673_v3  ;;  %vm1762_vm1 = vcmp.ne.s16.totalorder %v745_v46, 0  ;;  %v477_v18 = vld [vmem:[%s1893_s11] sm:$0xff] }
 0x432   : > { %v624_v54 = vmul.f32 %v622_v49, %v620_v51  ;;  %vm1719_vm2 = vcmp.eq.s32.totalorder %v719_v22, 1  ;;  %v759_v49 = vsel %vm758_vm11, 65537, %v1370_v36 }
 0x433   : > { %vm721_vm7 = vmpackc.low %vm1719_vm2, %vm1719_vm2 }
 0x434   : > { %v628_v56 = vadd.f32 %v626_v53, %v624_v54  ;;  %v722_v41 = vsel %vm721_vm7, 65537, %v1370_v36  ;;  %v763_v53 = vrot.slane %v759_v49, %v1673_v3  ;;  %v778_v54 = vsel %vm777_vm15, 65537, %v1370_v36 }
 0x435   : > { %v726_v44 = vrot.slane %v722_v41, %v1673_v3  ;;  %vm1379_vm7 = vmmov 0  }
 0x436   : > { %v1644_v57 = vpack.c.bf16 %v628_v56, %v627_v55  ;;  %v782_v56 = vrot.slane %v778_v54, %v1673_v3  ;;  %vm1772_vm2 = vcmp.ne.s16.totalorder %v763_v53, 0  ;;  %v1378_v3 = vmov 0.0  }
 0x437   : > { %vm1753_vm13 = vcmp.ne.s16.totalorder %v726_v44, 0  ;;  %1096 = vmatprep.subr.bf16.mxu0 %v1378_v3  ;;  %1098 = vmatprep.mubr.msk.bf16.mxu0 %vm1379_vm7, %v1378_v3 }
 0x438   : > { %656 = vrot.lane.b32.xlu1 %v1644_v57, %s1371_s12  ;;  %637 = vrot.lane.b32.xlu0 %v1644_v57, %s1372_s14  ;;  %vm1779_vm6 = vcmp.ne.s16.totalorder %v782_v56, 0 }
 0x439   : > { %1097 = vmatpush3.bf16.msra.mxu0 %v476_v2 }
 0x43a   : > { %912 = vmatprep.subr.bf16.mxu0 %v1370_v36 }
 0x43c   : > { %693 = vrot.lane.b32.xlu1 %v1644_v57, %s1373_s18  ;;  %674 = vrot.lane.b32.xlu0 %v1644_v57, %s1374_s28 }
 0x43d   : > { %1099 = vmatmul.mubr.msk.bf16.vlgmr.msra.gmra.mrb[0].mxu0 %vm483_vm0, %v475_v5 }
 0x440   : > { %729 = vrot.lane.b32.xlu1 %v1644_v57, %s1375_s15  ;;  %711 = vrot.lane.b32.xlu0 %v1644_v57, %s1376_s27 }
 0x444   : > { %766 = vrot.lane.b32.xlu1 %v1644_v57, %s1377_s30  ;;  %748 = vrot.lane.b32.xlu0 %v1644_v57, %s1366_s29 }
 0x448   : > { %789 = vperm.xlu0 %1194, %v785_v59   ;;  %794 = vperm.xlu1 %1195, %v786_v60  }
 0x4aa   : > { %v638_v20 = vpop.permute.xlu0 %637  ;;  %v657_v23 = vpop.permute.xlu1 %656 }
 0x4ab   : > { %v655_v21 = vsel %vm1693_vm14, %v638_v20, 0  ;;  %v673_v28 = vsel %vm1708_vm3, %v657_v23, 0  ;;  %v1088_v20 = vcombine.high %v854_v19, %v854_v19 }
 0x4ac   : > { %810 = vmatpush1.bf16.msra.mxu1 %v655_v21 }
 0x4ad   : > { %811 = vmatprep.subr.bf16.mxu1 %v1370_v36  ;;  %1089 = vmatprep.mubr.msk.bf16.mxu0 %vm483_vm0, %v1088_v20 }
 0x4ae   : > { %v675_v32 = vpop.permute.xlu0 %674  ;;  %v694_v38 = vpop.permute.xlu1 %693 }
 0x4af   : > { %v692_v35 = vsel %vm1724_vm5, %v675_v32, 0  ;;  %v710_v42 = vsel %vm1739_vm9, %v694_v38, 0 }
 0x4b0   : > { %812 = vmatpush1.bf16.msra.mxu1 %v673_v28 }
 0x4b1   : > { %813 = vmatprep.subr.bf16.mxu1 %v1370_v36 }
 0x4b2   : > { %v712_v47 = vpop.permute.xlu0 %711  ;;  %v730_v51 = vpop.permute.xlu1 %729 }
 0x4b3   : > { %v728_v50 = vsel %vm1753_vm13, %v712_v47, 0  ;;  %v747_v55 = vsel %vm1762_vm1, %v730_v51, 0 }
 0x4b4   : > { %814 = vmatpush1.bf16.msra.mxu1 %v692_v35 }
 0x4b5   : > { %815 = vmatprep.subr.bf16.mxu1 %v1370_v36 }
 0x4b6   : > { %v767_v60 = vpop.permute.xlu1 %766 }
 0x4b7   : > { %v784_v62 = vsel %vm1779_vm6, %v767_v60, 0 }
 0x4b8   : > { %816 = vmatpush1.bf16.msra.mxu1 %v710_v42 }
 0x4b9   : > { %817 = vmatprep.subr.bf16.mxu1 %v1370_v36 }
 0x4bc   : > { %818 = vmatpush1.bf16.msra.mxu1 %v1644_v57  ;;  %v749_v57 = vpop.permute.xlu0 %748 }
 0x4bd   : > { %819 = vmatprep.subr.bf16.mxu1 %v1370_v36  ;;  %v765_v59 = vsel %vm1772_vm2, %v749_v57, 0 }
 0x4c0   : > { %820 = vmatpush1.bf16.msra.mxu1 %v728_v50 }
 0x4c1   : > { %821 = vmatprep.subr.bf16.mxu1 %v1370_v36 }
 0x4c4   : > { %822 = vmatpush1.bf16.msra.mxu1 %v747_v55 }
 0x4c5   : > { %823 = vmatprep.subr.bf16.mxu1 %v1370_v36 }
 0x4c7   : > { %v790_v4 = vpop.permute.xlu0 %789  ;;  %v795_v7 = vpop.permute.xlu1 %794 }
 0x4c8   : > { %824 = vmatpush1.bf16.msra.mxu1 %v765_v59 }
 0x4c9   : > { %825 = vmatprep.subr.bf16.mxu1 %v1370_v36 }
 0x4cc   : > { %826 = vmatpush1.bf16.msra.mxu1 %v784_v62 }
 0x4cf   : > { %842 = vmatmul.mubr.bf16.vlgmr.msra.gmra.mrb[0].mxu1 %v1196_v63 }
 0x5a2   : > { %v843_v6 = vpop.f32.mrb[0].mxu1 }
 0x5a3   : > { %v844_v8 = vadd.f32 %v843_v6, %v790_v4  ;;  %v845_v9 = vpop.f32.mrb[1].mxu1 }
 0x5a4   : > { %v846_v10 = vpop.f32.mrb[2].mxu1 }
 0x5a5   : > { %v850_v0 = vmax.f32 %v844_v8, 0.0  ;;  %v847_v1 = vadd.f32 %v846_v10, %v795_v7  ;;  %v848_v11 = vpop.f32.mrb[3].mxu1 }
 0x5a7   : > { %v851_v12 = vmax.f32 %v847_v1, 0.0  ;;  %v852_v13 = vmul.f32 %v850_v0, %v850_v0 }
 0x5a9   : > { %v853_v14 = vmul.f32 %v851_v12, %v851_v12 }
 0x5ab   : > { %v855_v15 = vpack.c.bf16 %v853_v14, %v852_v13 }
 0x5ad   : > { %862 = vrot.lane.b32.xlu0 %v855_v15, %s1371_s12  ;;  %857 = vrot.lane.b32.xlu1 %v855_v15, %s1372_s14  ;;  %s1295_s12 = scalar_lea.vmem %s1294_s13, 256 }
 0x5b1   : > { %872 = vrot.lane.b32.xlu0 %v855_v15, %s1373_s18  ;;  %867 = vrot.lane.b32.xlu1 %v855_v15, %s1374_s28 }
 0x5b5   : > { %882 = vrot.lane.b32.xlu0 %v855_v15, %s1375_s15  ;;  %877 = vrot.lane.b32.xlu1 %v855_v15, %s1376_s27  ;;  %s1945_s15 = sld [smem:[#allocation17_spill]]  ;;  %s1091_s27 = sshll.u32 %s1467_s25, 7 }
 0x5b6   : > { %s1840_s21 = scalar_lea.hbm %s1946_s23, %s1091_s27 }
 0x5b9   : > { %892 = vrot.lane.b32.xlu0 %v855_v15, %s1377_s30  ;;  %887 = vrot.lane.b32.xlu1 %v855_v15, %s1366_s29  ;;  %s457_s29 = sand.u32 1, %s1351_s22  }
 0x5ba   : > { %s1080_s28 = sshll.u32 %s457_s29, 3  ;;  %s955_s25 = scalar_lea.sflag [#allocation4], %s457_s29 }
 0x5bb   : > { %s459_s30 = scalar_lea.vmem [#allocation8], %s1080_s28  ;;  %p1948_p7 = scmp.ne.s32.totalorder %s1945_s15, 0 }
 0x5bc   : > { %s968_s16 = sshll.u32 %s459_s30, 4  ;;  %s1842_s16 = int_to_ptr.vmem [resolvable:$true] %s968_s16 }
 0x5bd   : > { %900 = vperm.xlu0 %1194, %v897_v16   ;;  %480 = vperm.xlu1 %1195, %v477_v18   ;;  %s1289_s20 = scalar_lea.vmem %s1842_s16, 128  ;;  %p1296_p13 = scmp.lt.s32.totalorder %s1842_s16, %s1294_s13 }
 0x5be   : > { %p1290_p12 = scmp.ne.s32.totalorder %s1842_s16, %s1289_s20  ;;  %p1297_p1 = scmp.lt.s32.totalorder %s1295_s12, %s1289_s20 }
 0x5c0   : > { %p1291_p8 = pnand %p1290_p12, %p1948_p7  ;;  %p1298_p6 = por %p1297_p1, %p1296_p13 }
 0x5c2   : > { %p1292_p11 = pneg %p1291_p8 }
 0x5c4   : > { %p1299_p9 = pnand %p1298_p6, %p1292_p11 }
 0x61f   : > { %v858_v21 = vpop.permute.xlu1 %857  ;;  %v863_v23 = vpop.permute.xlu0 %862 }
 0x620   : > { %v861_v22 = vsel %vm1693_vm14, %v858_v21, 0  ;;  %v866_v25 = vsel %vm1708_vm3, %v863_v23, 0 }
 0x621   : > { %913 = vmatpush1.bf16.msra.mxu0 %v861_v22 }
 0x622   : > { %914 = vmatprep.subr.bf16.mxu0 %v1370_v36 }
 0x623   : > { %v868_v26 = vpop.permute.xlu1 %867  ;;  %v873_v28 = vpop.permute.xlu0 %872 }
 0x624   : > { %v871_v27 = vsel %vm1724_vm5, %v868_v26, 0  ;;  %v876_v17 = vsel %vm1739_vm9, %v873_v28, 0 }
 0x625   : > { %915 = vmatpush1.bf16.msra.mxu0 %v866_v25 }
 0x626   : > { %916 = vmatprep.subr.bf16.mxu0 %v1370_v36 }
 0x627   : > { %v878_v29 = vpop.permute.xlu1 %877  ;;  %v883_v30 = vpop.permute.xlu0 %882 }
 0x628   : > { %v881_v24 = vsel %vm1753_vm13, %v878_v29, 0  ;;  %v886_v31 = vsel %vm1762_vm1, %v883_v30, 0 }
 0x629   : > { %917 = vmatpush1.bf16.msra.mxu0 %v871_v27 }
 0x62a   : > { %918 = vmatprep.subr.bf16.mxu0 %v1370_v36 }
 0x62b   : > { %v888_v32 = vpop.permute.xlu1 %887  ;;  %v893_v34 = vpop.permute.xlu0 %892 }
 0x62c   : > { %v891_v33 = vsel %vm1772_vm2, %v888_v32, 0  ;;  %v896_v35 = vsel %vm1779_vm6, %v893_v34, 0 }
 0x62d   : > { %919 = vmatpush1.bf16.msra.mxu0 %v876_v17 }
 0x62e   : > { %920 = vmatprep.subr.bf16.mxu0 %v1370_v36 }
 0x631   : > { %921 = vmatpush1.bf16.msra.mxu0 %v855_v15 }
 0x632   : > { %922 = vmatprep.subr.bf16.mxu0 %v1370_v36 }
 0x635   : > { %923 = vmatpush1.bf16.msra.mxu0 %v881_v24 }
 0x636   : > { %924 = vmatprep.subr.bf16.mxu0 %v1370_v36 }
 0x639   : > { %925 = vmatpush1.bf16.msra.mxu0 %v886_v31 }
 0x63a   : > { %926 = vmatprep.subr.bf16.mxu0 %v1370_v36 }
 0x63c   : > { %v901_v38 = vpop.permute.xlu0 %900  ;;  %v481_v39 = vpop.permute.xlu1 %480 }
 0x63d   : > { %927 = vmatpush1.bf16.msra.mxu0 %v891_v33  ;;  %v1102_v40 = vadd.f32 %v901_v38, %v481_v39 }
 0x63e   : > { %928 = vmatprep.subr.bf16.mxu0 %v1370_v36 }
 0x641   : > { %929 = vmatpush1.bf16.msra.mxu0 %v896_v35 }
 0x644   : > { %945 = vmatmul.mubr.bf16.vlgmr.msra.gmra.mrb[0].mxu0 %v1087_v37 }
 0x717   : > { %v946_v41 = vpop.f32.mrb[0].mxu0 }
 0x718   : > { %v1103_v42 = vadd.f32 %v1102_v40, %v946_v41  ;;  %v948_v43 = vpop.f32.mrb[1].mxu0 }
 0x719   : > { %v949_v36 = vpop.f32.mrb[2].mxu0 }
 0x71a   : > { %953 = vst [vmem:[%s459_s30] sm:$0xff] %v1103_v42  ;;  %v950_v44 = vpop.f32.mrb[3].mxu0 }
 0x71b   : > { %1302 = shalt.err (!%p1299_p9)
}
 0x71c   : > { %s1303_s14 = scalar_lea.hbm %s1840_s21, 128  ;;  %s1307_s28 = scalar_lea.hbm %s1947_s17, 256 }
 0x71d   : > { %p1304_p2 = scmp.ne.s32.totalorder %s1840_s21, %s1303_s14  ;;  %p1308_p5 = scmp.lt.u32.totalorder %s1840_s21, %s1947_s17 }
 0x71e   : > { %p1309_p10 = scmp.lt.u32.totalorder %s1307_s28, %s1303_s14  ;;  %p1311_p12 = scmp.lt.u32.totalorder %s1303_s14, %s1840_s21 }
 0x71f   : > { %p1305_p0 = pnand %p1304_p2, %p1948_p7 }
 0x720   : > { %p1310_p4 = por %p1309_p10, %p1308_p5 }
 0x721   : > { %p1306_p3 = pneg %p1305_p0 }
 0x722   : > { %p1312_p8 = por %p1311_p12, %p1310_p4 }
 0x724   : > { %p1313_p11 = pnand %p1312_p8, %p1306_p3 }
 0x726   : > { %1316 = shalt.err (!%p1313_p11)
}
 0x727   : > { %1120 = dma.vmem_to_hbm [thread:$0]  (%p1948_p7), %s1842_s16, 128, %s1840_s21, %s955_s25  }
 0x728 PF: > { %s1949_s19 = sld [smem:[#allocation14_spill]]  ;;  %s1950_s26 = sld [smem:[#allocation12_spill]] }
 0x729   : > { %s1951_s23 = sld [smem:[#allocation18_spill]] }
 0x72e   : > { %p1142_p13 = scmp.ge.s32.totalorder %s1949_s19, 2  ;;  %s980_s20 = sand.u32 1, %s1950_s26  }
 0x72f   : > { %p1952_p1 = scmp.ne.s32.totalorder %s1951_s23, 0  ;;  %s981_s24 = scalar_lea.sflag [#allocation4], %s980_s20 }
 0x731   : > { %p1133_p6 = pnand %p1142_p13, %p1952_p1 }
 0x733   : > { %1342 = dma.done.wait (!%p1133_p6), %s981_s24, 128  }
 0x734   : > { %1344 = vsyncadd (!%p1133_p6), %s981_s24, 4294967168  ;;  %s1953_s24 = sld [smem:[#allocation15_spill]]  ;;  %s1954_s13 = sld [smem:[#allocation13_spill]] }
 0x735   : > { %s1955_s23 = sld [smem:[#allocation16_spill]]  ;;  %s1956_s21 = smov %s1351_s22 }
 0x73a   : > { %p24_p9 = scmp.ge.s32.totalorder %s1953_s24, 4   ;;  %s1957_s22 = smov %s1954_s13 }
 0x73c   :  { %26 = sbr.rel (!%p24_p9) target bundleno = 7 (0x7), region = 119 }
 0x743   :  { %986 = vsyncpa [#allocation3], 1 }
 0x744   :  { %988 = vsyncpa [#allocation3 + $0x1], 1 }
 0x745   :  { %989 = vsyncpa [#allocation6], 1 }
 0x746   :  { %990 = vsyncpa [#allocation4], 1 }
 0x747   :  { %992 = vsyncpa [#allocation4 + $0x1], 1 }

</bundles_post_ra>
